<compile_context>
chip_gen: v6e
topology: v6e:2x2x1
jax: 0.10.0
libtpu: 0.0.40
codegen_flags: <defaults>
</compile_context>

<pallas_src>
import jax
import jax.numpy as jnp
from jax.experimental import pallas as pl
from jax.experimental.pallas import tpu as pltpu

IN_FEATURES = 640
OUT_FEATURES = 136


def _linear_kernel(x_ref, w_ref, b_ref, o_ref):
    # x_ref : (B, 640)    VMEM  f32
    # w_ref : (640, 136)  VMEM  bf16  (pre-transposed (in, out) at param-prep time)
    # b_ref : (1, 136)    VMEM  f32
    # o_ref : (B, 136)    VMEM  f32
    acc = jax.lax.dot_general(
        x_ref[...].astype(w_ref.dtype),        # cheap VPU cast -> MXU-native bf16 x bf16
        w_ref[...],
        dimension_numbers=(((1,), (0,)), ((), ())),  # standard (M,K)x(K,N), no transpose
        preferred_element_type=jnp.float32,          # f32 accumulation on the MXU
    )
    o_ref[...] = (acc + b_ref[...]).astype(o_ref.dtype)


def prepare_params(weight, bias):
    """One-time, outside the hot path: (out,in) f32 -> (in,out) bf16 weight, (1,out) f32 bias."""
    w_t = jnp.asarray(weight).T.astype(jnp.bfloat16)            # (640, 136)
    b2 = jnp.asarray(bias, dtype=jnp.float32).reshape(1, OUT_FEATURES)
    return w_t, b2


def other_model_forward(x1, w_t, b2):
    """x1: (B, 640) batch, or any shape with exactly 640 elements (module semantics).

    w_t: (640, 136) bf16 (from prepare_params); b2: (1, 136) f32.
    """
    if x1.ndim == 2 and x1.shape[-1] == IN_FEATURES:
        x2 = x1                                   # batched path: one call for all rows
    elif x1.size == IN_FEATURES:
        x2 = x1.reshape(1, IN_FEATURES)           # single-sample path (original module)
    else:
        raise ValueError(
            f"other_model_forward expects (B, {IN_FEATURES}) or exactly "
            f"{IN_FEATURES} elements, got shape {x1.shape}"
        )
    x2 = x2.astype(jnp.float32)
    batch = x2.shape[0]

    vmem_spec = pl.BlockSpec(memory_space=pltpu.MemorySpace.VMEM)
    bytes_accessed = (
        x2.size * 4 + w_t.size * 2 + b2.size * 4 + batch * OUT_FEATURES * 4
    )
    return pl.pallas_call(
        _linear_kernel,
        out_shape=jax.ShapeDtypeStruct((batch, OUT_FEATURES), jnp.float32),
        in_specs=[vmem_spec, vmem_spec, vmem_spec],
        out_specs=vmem_spec,
        cost_estimate=pl.CostEstimate(
            flops=2 * batch * IN_FEATURES * OUT_FEATURES,
            transcendentals=0,
            bytes_accessed=bytes_accessed,
        ),
    )(x2, w_t, b2)


def init_params(key):
    # Deterministic init mimicking torch.nn.Linear default (uniform +/- 1/sqrt(fan_in)).
    kw, kb = jax.random.split(key)
    bound = 1.0 / (IN_FEATURES ** 0.5)
    weight = jax.random.uniform(
        kw, (OUT_FEATURES, IN_FEATURES), dtype=jnp.float32, minval=-bound, maxval=bound
    )
    bias = jax.random.uniform(
        kb, (OUT_FEATURES,), dtype=jnp.float32, minval=-bound, maxval=bound
    )
    return weight, bias


if __name__ == "__main__":
    key = jax.random.PRNGKey(0)
    k_x, k_p = jax.random.split(key)

    weight, bias = init_params(k_p)
    w_t, b2 = prepare_params(weight, bias)          # one-time, outside the hot path

    # --- single-sample path, consistent with the module: 10 * 64 = 640 elements ---
    x1 = jax.random.normal(k_x, (10, 64), dtype=jnp.float32)
    out = jax.block_until_ready(other_model_forward(x1, w_t, b2))
    ref = x1.reshape(1, IN_FEATURES) @ weight.T + bias[None, :]
    assert out.shape == (1, OUT_FEATURES)
    assert jnp.allclose(out, ref, atol=2e-2, rtol=2e-2), "single-sample mismatch"

    # --- batched path: one pallas_call amortizes launch/DMA overhead over 8 rows ---
    xb = jax.random.normal(jax.random.PRNGKey(1), (8, IN_FEATURES), dtype=jnp.float32)
    outb = jax.block_until_ready(other_model_forward(xb, w_t, b2))
    refb = xb @ weight.T + bias[None, :]
    assert outb.shape == (8, OUT_FEATURES)
    assert jnp.allclose(outb, refb, atol=2e-2, rtol=2e-2), "batched mismatch"

    print("KERNEL_OK")
</pallas_src>

<mosaic_0001>
module attributes {stable_mosaic.version = 11 : i64} {
  func.func @_linear_kernel(%arg0: memref<1x640xf32, #tpu.memory_space<vmem>>, %arg1: memref<640x136xbf16, #tpu.memory_space<vmem>>, %arg2: memref<1x136xf32, #tpu.memory_space<vmem>>, %arg3: memref<1x136xf32, #tpu.memory_space<vmem>>) attributes {dimension_semantics = [], scalar_prefetch = 0 : i64, scratch_operands = 0 : i64, tpu.core_type = #tpu.core_type<tc>} {
    %c0 = arith.constant 0 : index
    %c0_0 = arith.constant 0 : index
    %0 = vector.load %arg0[%c0, %c0_0] : memref<1x640xf32, #tpu.memory_space<vmem>>, vector<1x640xf32>
    %1 = arith.truncf %0 : vector<1x640xf32> to vector<1x640xbf16>
    %c0_1 = arith.constant 0 : index
    %c0_2 = arith.constant 0 : index
    %2 = vector.load %arg1[%c0_1, %c0_2] : memref<640x136xbf16, #tpu.memory_space<vmem>>, vector<640x136xbf16>
    %cst = arith.constant dense<0.000000e+00> : vector<1x136xf32>
    %3 = tpu.matmul %1, %2, %cst {dimension_numbers = #tpu.dot_dimension_numbers<[1], [0], [0], [1], [0, 0, 1, 1], [], []>} : vector<1x640xbf16>, vector<640x136xbf16>, vector<1x136xf32> -> vector<1x136xf32>
    %c0_3 = arith.constant 0 : index
    %c0_4 = arith.constant 0 : index
    %4 = vector.load %arg2[%c0_3, %c0_4] : memref<1x136xf32, #tpu.memory_space<vmem>>, vector<1x136xf32>
    %5 = arith.addf %3, %4 : vector<1x136xf32>
    %c0_5 = arith.constant 0 : index
    %c0_6 = arith.constant 0 : index
    %6 = vector.load %arg3[%c0_5, %c0_6] : memref<1x136xf32, #tpu.memory_space<vmem>>, vector<1x136xf32>
    tpu.vector_store %arg3[%c0_5, %c0_6], %5 {strides = array<i32>} : memref<1x136xf32, #tpu.memory_space<vmem>>, vector<1x136xf32>,
    return
  }
}

</mosaic_0001>

<bundles_post_ra>
// kernel: tpu_custom_call.1
= control target key start
LH: loop header
LB: loop body
LE: loop exit
PB: predicated region body
PF: predicated region fallthrough
CT: control target
= control target key end

     0   :  { %v18_v35 = vlaneseq  ;;  %s1222_s0 = inlined_call_operand.vmem [shape: f32[1,640], index: 0, kind: input, shape index: {}]   ;;  %s1223_s1 = inlined_call_operand.vmem [shape: bf16[640,136], index: 1, kind: input, shape index: {}]   ;;  %s1224_s2 = inlined_call_operand.vmem [shape: f32[1,136], index: 2, kind: input, shape index: {}]   ;;  %s1225_s3 = inlined_call_operand.hbm [shape: f32[1,136], index: 3, kind: output, shape index: {}]  }
   0x1   :  { %v783_v0 = vld [vmem:[%s1223_s1 + $0x74] ss:$8 sps:$4 sm:$0xff]   ;;  %v785_v1 = vld [vmem:[%s1223_s1 + $0x70] ss:$8 sps:$4 sm:$0xff]   ;;  %v789_v4 = vld [vmem:[%s1223_s1 + $0x64] ss:$8 sps:$4 sm:$0xff]  }
   0x2   :  { %540 = vmatprep.subr.bf16.mxu0 %v783_v0  ;;  %v786_v2 = vld [vmem:[%s1223_s1 + $0x174] ss:$8 sps:$4 sm:$0xff]   ;;  %v788_v3 = vld [vmem:[%s1223_s1 + $0x170] ss:$8 sps:$4 sm:$0xff]   ;;  %v791_v5 = vld [vmem:[%s1223_s1 + $0x60] ss:$8 sps:$4 sm:$0xff]  }
   0x3   :  { %541 = vmatpush1.bf16.msra.mxu0 %v785_v1  ;;  %581 = vmatprep.subr.bf16.mxu1 %v786_v2  ;;  %v792_v6 = vld [vmem:[%s1223_s1 + $0x164] ss:$8 sps:$4 sm:$0xff]   ;;  %v794_v7 = vld [vmem:[%s1223_s1 + $0x160] ss:$8 sps:$4 sm:$0xff]   ;;  %v795_v8 = vld [vmem:[%s1223_s1 + $0x54] ss:$8 sps:$4 sm:$0xff]  }
   0x4   :  { %582 = vmatpush1.bf16.msra.mxu1 %v788_v3  ;;  %542 = vmatprep.subr.bf16.mxu0 %v789_v4  ;;  %v797_v9 = vld [vmem:[%s1223_s1 + $0x50] ss:$8 sps:$4 sm:$0xff]   ;;  %v798_v10 = vld [vmem:[%s1223_s1 + $0x154] ss:$8 sps:$4 sm:$0xff]   ;;  %v801_v11 = vld [vmem:[%s1223_s1 + $0x44] ss:$8 sps:$4 sm:$0xff]  }
   0x5   :  { %583 = vmatprep.subr.bf16.mxu1 %v792_v6  ;;  %v800_v12 = vld [vmem:[%s1223_s1 + $0x150] ss:$8 sps:$4 sm:$0xff]   ;;  %v804_v13 = vld [vmem:[%s1223_s1 + $0x144] ss:$8 sps:$4 sm:$0xff]   ;;  %v803_v14 = vld [vmem:[%s1223_s1 + $0x40] ss:$8 sps:$4 sm:$0xff]  }
   0x6   :  { %v807_v15 = vld [vmem:[%s1223_s1 + $0x34] ss:$8 sps:$4 sm:$0xff]   ;;  %v806_v16 = vld [vmem:[%s1223_s1 + $0x140] ss:$8 sps:$4 sm:$0xff]   ;;  %v809_v18 = vld [vmem:[%s1223_s1 + $0x30] ss:$8 sps:$4 sm:$0xff]  }
   0x7   :  { %543 = vmatpush1.bf16.msra.mxu0 %v791_v5  ;;  %v810_v17 = vld [vmem:[%s1223_s1 + $0x134] ss:$8 sps:$4 sm:$0xff]   ;;  %v813_v19 = vld [vmem:[%s1223_s1 + $0x24] ss:$8 sps:$4 sm:$0xff]   ;;  %v812_v20 = vld [vmem:[%s1223_s1 + $0x130] ss:$8 sps:$4 sm:$0xff]  }
   0x8   :  { %544 = vmatprep.subr.bf16.mxu0 %v795_v8  ;;  %584 = vmatpush1.bf16.msra.mxu1 %v794_v7  ;;  %v816_v21 = vld [vmem:[%s1223_s1 + $0x124] ss:$8 sps:$4 sm:$0xff]   ;;  %v815_v22 = vld [vmem:[%s1223_s1 + $0x20] ss:$8 sps:$4 sm:$0xff]   ;;  %v819_v23 = vld [vmem:[%s1223_s1 + $0x14] ss:$8 sps:$4 sm:$0xff]  }
   0x9   :  { %585 = vmatprep.subr.bf16.mxu1 %v798_v10  ;;  %v818_v24 = vld [vmem:[%s1223_s1 + $0x120] ss:$8 sps:$4 sm:$0xff]   ;;  %v822_v25 = vld [vmem:[%s1223_s1 + $0x114] ss:$8 sps:$4 sm:$0xff]   ;;  %v821_v26 = vld [vmem:[%s1223_s1 + $0x10] ss:$8 sps:$4 sm:$0xff]  }
   0xa   :  { %v825_v27 = vld [vmem:[%s1223_s1 + $0x4] ss:$8 sps:$4 sm:$0xff]   ;;  %v824_v28 = vld [vmem:[%s1223_s1 + $0x110] ss:$8 sps:$4 sm:$0xff]   ;;  %v827_v30 = vld [vmem:[%s1223_s1] ss:$8 sps:$4 sm:$0xff]  }
   0xb   :  { %545 = vmatpush1.bf16.msra.mxu0 %v797_v9  ;;  %v828_v29 = vld [vmem:[%s1223_s1 + $0x104] ss:$8 sps:$4 sm:$0xff]   ;;  %v831_v31 = vld [vmem:[%s1223_s1 + $0xf4] ss:$8 sps:$4 sm:$0xff]   ;;  %v830_v32 = vld [vmem:[%s1223_s1 + $0x100] ss:$8 sps:$4 sm:$0xff]  }
   0xc   :  { %546 = vmatprep.subr.bf16.mxu0 %v801_v11  ;;  %586 = vmatpush1.bf16.msra.mxu1 %v800_v12  ;;  %v834_v33 = vld [vmem:[%s1223_s1 + $0x1f4] ss:$8 sps:$4 sm:$0xff]   ;;  %v833_v34 = vld [vmem:[%s1223_s1 + $0xf0] ss:$8 sps:$4 sm:$0xff]   ;;  %v837_v36 = vld [vmem:[%s1223_s1 + $0xe4] ss:$8 sps:$4 sm:$0xff]  }
   0xd   :  { %587 = vmatprep.subr.bf16.mxu1 %v804_v13  ;;  %v836_v37 = vld [vmem:[%s1223_s1 + $0x1f0] ss:$8 sps:$4 sm:$0xff]   ;;  %v840_v38 = vld [vmem:[%s1223_s1 + $0x1e4] ss:$8 sps:$4 sm:$0xff]   ;;  %v839_v39 = vld [vmem:[%s1223_s1 + $0xe0] ss:$8 sps:$4 sm:$0xff]  }
   0xe   :  { %v1066_v40 = vshrl.u32 %v18_v35, 7  ;;  %v843_v41 = vld [vmem:[%s1223_s1 + $0xd4] ss:$8 sps:$4 sm:$0xff]   ;;  %v842_v42 = vld [vmem:[%s1223_s1 + $0x1e0] ss:$8 sps:$4 sm:$0xff]  }
   0xf   :  { %547 = vmatpush1.bf16.msra.mxu0 %v803_v14  ;;  %v846_v43 = vld [vmem:[%s1223_s1 + $0x1d4] ss:$8 sps:$4 sm:$0xff]   ;;  %v845_v44 = vld [vmem:[%s1223_s1 + $0xd0] ss:$8 sps:$4 sm:$0xff]   ;;  %v849_v47 = vld [vmem:[%s1223_s1 + $0xc4] ss:$8 sps:$4 sm:$0xff]  }
  0x10   :  { %548 = vmatprep.subr.bf16.mxu0 %v807_v15  ;;  %588 = vmatpush1.bf16.msra.mxu1 %v806_v16  ;;  %v24_v45 = vsub.s32 1, %v1066_v40  ;;  %v32_v46 = vsub.s32 3, %v1066_v40  ;;  %v848_v48 = vld [vmem:[%s1223_s1 + $0x1d0] ss:$8 sps:$4 sm:$0xff]   ;;  %v852_v49 = vld [vmem:[%s1223_s1 + $0x1c4] ss:$8 sps:$4 sm:$0xff]  }
  0x11   :  { %589 = vmatprep.subr.bf16.mxu1 %v810_v17  ;;  %v1094_v50 = vld [vmem:[%s1222_s0] sm:$0x1f]  ;;  %v855_v54 = vld [vmem:[%s1223_s1 + $0xb4] ss:$8 sps:$4 sm:$0xff]   ;;  %v857_v59 = vld [vmem:[%s1223_s1 + $0xb0] ss:$8 sps:$4 sm:$0xff]  }
  0x12   :  { %v851_v51 = vld [vmem:[%s1223_s1 + $0xc0] ss:$8 sps:$4 sm:$0xff]   ;;  %v25_v52 = vrot.slane %v1094_v50, %v24_v45  ;;  %v33_v53 = vrot.slane %v1094_v50, %v32_v46  ;;  %v858_v58 = vld [vmem:[%s1223_s1 + $0x1b4] ss:$8 sps:$4 sm:$0xff]   ;;  %v861_v60 = vld [vmem:[%s1223_s1 + $0xa4] ss:$8 sps:$4 sm:$0xff]  }
  0x13   :  { %549 = vmatpush1.bf16.msra.mxu0 %v809_v18  ;;  %v854_v55 = vld [vmem:[%s1223_s1 + $0x1c0] ss:$8 sps:$4 sm:$0xff]   ;;  %v860_v61 = vld [vmem:[%s1223_s1 + $0x1b0] ss:$8 sps:$4 sm:$0xff]   ;;  %v864_v62 = vld [vmem:[%s1223_s1 + $0x1a4] ss:$8 sps:$4 sm:$0xff]  }
  0x14   :  { %550 = vmatprep.subr.bf16.mxu0 %v813_v19  ;;  %590 = vmatpush1.bf16.msra.mxu1 %v812_v20  ;;  %v44_v56 = vpack.c.bf16 %v25_v52, %v25_v52  ;;  %v46_v57 = vpack.c.bf16 %v33_v53, %v33_v53  ;;  %v863_v63 = vld [vmem:[%s1223_s1 + $0xa0] ss:$8 sps:$4 sm:$0xff]   ;;  %v867_v0 = vld [vmem:[%s1223_s1 + $0x94] ss:$8 sps:$4 sm:$0xff]   ;;  %v20_v3 = vsub.s32 0, %v1066_v40 }
  0x15   :  { %591 = vmatprep.subr.bf16.mxu1 %v816_v21  ;;  %v866_v1 = vld [vmem:[%s1223_s1 + $0x1a0] ss:$8 sps:$4 sm:$0xff]   ;;  %v870_v2 = vld [vmem:[%s1223_s1 + $0x194] ss:$8 sps:$4 sm:$0xff]  }
  0x16   :  { %572 = vmatprep.mubr.bf16.mxu0 %v44_v56  ;;  %613 = vmatprep.mubr.bf16.mxu1 %v46_v57 }
  0x17   :  { %551 = vmatpush1.bf16.msra.mxu0 %v815_v22 }
  0x18   :  { %552 = vmatprep.subr.bf16.mxu0 %v819_v23  ;;  %592 = vmatpush1.bf16.msra.mxu1 %v818_v24 }
  0x19   :  { %593 = vmatprep.subr.bf16.mxu1 %v822_v25 }
  0x1b   :  { %553 = vmatpush1.bf16.msra.mxu0 %v821_v26 }
  0x1c   :  { %554 = vmatprep.subr.bf16.mxu0 %v825_v27  ;;  %594 = vmatpush1.bf16.msra.mxu1 %v824_v28 }
  0x1d   :  { %595 = vmatprep.subr.bf16.mxu1 %v828_v29 }
  0x1f   :  { %555 = vmatpush1.bf16.msra.mxu0 %v827_v30 }
  0x20   :  { %556 = vmatprep.subr.bf16.mxu0 %v831_v31  ;;  %596 = vmatpush1.bf16.msra.mxu1 %v830_v32 }
  0x21   :  { %597 = vmatprep.subr.bf16.mxu1 %v834_v33 }
  0x23   :  { %557 = vmatpush2.bf16.msra.mxu0 %v833_v34 }
  0x24   :  { %558 = vmatprep.subr.bf16.mxu0 %v837_v36  ;;  %598 = vmatpush2.bf16.msra.mxu1 %v836_v37 }
  0x25   :  { %599 = vmatprep.subr.bf16.mxu1 %v840_v38 }
  0x27   :  { %559 = vmatpush2.bf16.msra.mxu0 %v839_v39 }
  0x28   :  { %560 = vmatprep.subr.bf16.mxu0 %v843_v41  ;;  %600 = vmatpush2.bf16.msra.mxu1 %v842_v42 }
  0x29   :  { %601 = vmatprep.subr.bf16.mxu1 %v846_v43 }
  0x2b   :  { %561 = vmatpush2.bf16.msra.mxu0 %v845_v44 }
  0x2c   :  { %562 = vmatprep.subr.bf16.mxu0 %v849_v47  ;;  %602 = vmatpush2.bf16.msra.mxu1 %v848_v48 }
  0x2d   :  { %603 = vmatprep.subr.bf16.mxu1 %v852_v49 }
  0x2f   :  { %563 = vmatpush2.bf16.msra.mxu0 %v851_v51 }
  0x30   :  { %564 = vmatprep.subr.bf16.mxu0 %v855_v54  ;;  %604 = vmatpush2.bf16.msra.mxu1 %v854_v55 }
  0x31   :  { %605 = vmatprep.subr.bf16.mxu1 %v858_v58 }
  0x33   :  { %565 = vmatpush2.bf16.msra.mxu0 %v857_v59 }
  0x34   :  { %566 = vmatprep.subr.bf16.mxu0 %v861_v60  ;;  %606 = vmatpush2.bf16.msra.mxu1 %v860_v61 }
  0x35   :  { %607 = vmatprep.subr.bf16.mxu1 %v864_v62 }
  0x36   :  { %8 = vsyncpa [#allocation3], 0  ;;  %v869_v4 = vld [vmem:[%s1223_s1 + $0x90] ss:$8 sps:$4 sm:$0xff]   ;;  %v873_v5 = vld [vmem:[%s1223_s1 + $0x84] ss:$8 sps:$4 sm:$0xff]   ;;  %v21_v9 = vrot.slane %v1094_v50, %v20_v3 }
  0x37   :  { %567 = vmatpush2.bf16.msra.mxu0 %v863_v63  ;;  %v28_v6 = vsub.s32 2, %v1066_v40  ;;  %v872_v7 = vld [vmem:[%s1223_s1 + $0x190] ss:$8 sps:$4 sm:$0xff]   ;;  %v876_v8 = vld [vmem:[%s1223_s1 + $0x184] ss:$8 sps:$4 sm:$0xff]   ;;  %v925_v19 = vmov 0  }
  0x38   :  { %568 = vmatprep.subr.bf16.mxu0 %v867_v0  ;;  %608 = vmatpush2.bf16.msra.mxu1 %v866_v1  ;;  %v875_v10 = vld [vmem:[%s1223_s1 + $0x80] ss:$8 sps:$4 sm:$0xff]   ;;  %v881_v11 = vld [vmem:[%s1223_s1 + $0x274] ss:$8 sps:$4 sm:$0xff]   ;;  %v43_v14 = vpack.c.bf16 %v21_v9, %v21_v9  ;;  %v879_v15 = vld [vmem:[%s1223_s1 + $0x270] ss:$8 sps:$4 sm:$0xff]  }
  0x39   :  { %609 = vmatprep.subr.bf16.mxu1 %v870_v2  ;;  %v29_v12 = vrot.slane %v1094_v50, %v28_v6  ;;  %v878_v13 = vld [vmem:[%s1223_s1 + $0x180] ss:$8 sps:$4 sm:$0xff]   ;;  %v884_v17 = vld [vmem:[%s1223_s1 + $0x264] ss:$8 sps:$4 sm:$0xff]   ;;  %v887_v20 = vld [vmem:[%s1223_s1 + $0x254] ss:$8 sps:$4 sm:$0xff]  }
  0x3a   :  { %v882_v18 = vld [vmem:[%s1223_s1 + $0x260] ss:$8 sps:$4 sm:$0xff]   ;;  %v885_v21 = vld [vmem:[%s1223_s1 + $0x250] ss:$8 sps:$4 sm:$0xff]   ;;  %v890_v22 = vld [vmem:[%s1223_s1 + $0x244] ss:$8 sps:$4 sm:$0xff]  }
  0x3b   :  { %569 = vmatpush2.bf16.msra.mxu0 %v869_v4  ;;  %v45_v16 = vpack.c.bf16 %v29_v12, %v29_v12  ;;  %v888_v23 = vld [vmem:[%s1223_s1 + $0x240] ss:$8 sps:$4 sm:$0xff]   ;;  %v893_v24 = vld [vmem:[%s1223_s1 + $0x234] ss:$8 sps:$4 sm:$0xff]   ;;  %v891_v25 = vld [vmem:[%s1223_s1 + $0x230] ss:$8 sps:$4 sm:$0xff]  }
  0x3c   :  { %570 = vmatprep.subr.bf16.mxu0 %v873_v5  ;;  %610 = vmatpush2.bf16.msra.mxu1 %v872_v7  ;;  %v896_v26 = vld [vmem:[%s1223_s1 + $0x224] ss:$8 sps:$4 sm:$0xff]   ;;  %v894_v27 = vld [vmem:[%s1223_s1 + $0x220] ss:$8 sps:$4 sm:$0xff]   ;;  %v899_v28 = vld [vmem:[%s1223_s1 + $0x214] ss:$8 sps:$4 sm:$0xff]  }
  0x3d   :  { %611 = vmatprep.subr.bf16.mxu1 %v876_v8  ;;  %v36_v29 = vsub.s32 4, %v1066_v40  ;;  %v897_v30 = vld [vmem:[%s1223_s1 + $0x210] ss:$8 sps:$4 sm:$0xff]   ;;  %v902_v31 = vld [vmem:[%s1223_s1 + $0x204] ss:$8 sps:$4 sm:$0xff]   ;;  %vm683_vm0 = vcmp.lt.s32.totalorder %v18_v35, 136 }
  0x3e   :  { %v900_v33 = vld [vmem:[%s1223_s1 + $0x200] ss:$8 sps:$4 sm:$0xff]   ;;  %v926_v49 = vmov 1966171168   ;;  %s927_s1 = smov [#allocation2]  }
  0x3f   :  { %571 = vmatpush2.bf16.msra.mxu0 %v875_v10  ;;  %v37_v32 = vrot.slane %v1094_v50, %v36_v29  ;;  %v128_v46 = vld [vmem:[%s1224_s2] sm:$0x3]  ;;  %v667_v50 = vunpack.c.l.s4 %v926_v49  ;;  %s692_s2 = sshll.u32 %s927_s1, 4  ;;  %s693_s2 = int_to_ptr.vmem [resolvable:$true] %s692_s2 }
  0x40   :  { %622 = vmatprep.subr.bf16.mxu0 %v881_v11  ;;  %612 = vmatpush2.bf16.msra.mxu1 %v878_v13  ;;  %v533_v47 = vrot.slane %v128_v46, %v20_v3  ;;  %v537_v48 = vrot.slane %v128_v46, %v24_v45  ;;  %s903_s11 = scalar_lea.vmem %s693_s2, 32  ;;  %p908_p1 = scmp.lt.s32.totalorder %s693_s2, %s693_s2 }
  0x41   :  { %v47_v34 = vpack.c.bf16 %v37_v32, %v37_v32  ;;  %v668_v53 = vunpack.c.0.s8 %v667_v50  ;;  %p904_p0 = scmp.ne.s32.totalorder %s693_s2, %s903_s11  ;;  %p909_p2 = scmp.lt.s32.totalorder %s903_s11, %s903_s11 }
  0x42   :  { %573 = vmatmul.mubr.bf16.vlgmr.msra.gmra.mxu0 %v43_v14 }
  0x43   :  { %623 = vmatpush1.bf16.msra.mxu0 %v879_v15  ;;  %654 = vmatprep.mubr.bf16.mxu0 %v925_v19  ;;  %v671_v60 = vsub.s32 %v668_v53, %v1066_v40  ;;  %p910_p3 = por %p909_p2, %p908_p1 }
  0x44   :  { %614 = vmatmul.mubr.bf16.vlgmr.msra.gmra.mxu1 %v45_v16  ;;  %624 = vmatprep.subr.bf16.mxu0 %v884_v17 }
  0x45   :  { %p911_p4 = pnand %p910_p3, %p904_p0 }
  0x47   :  { %625 = vmatpush1.bf16.msra.mxu0 %v882_v18 }
  0x48   :  { %626 = vmatprep.subr.bf16.mxu0 %v887_v20 }
  0x4b   :  { %627 = vmatpush1.bf16.msra.mxu0 %v885_v21 }
  0x4c   :  { %628 = vmatprep.subr.bf16.mxu0 %v890_v22 }
  0x4f   :  { %629 = vmatpush1.bf16.msra.mxu0 %v888_v23 }
  0x50   :  { %630 = vmatprep.subr.bf16.mxu0 %v893_v24 }
  0x53   :  { %631 = vmatpush1.bf16.msra.mxu0 %v891_v25 }
  0x54   :  { %632 = vmatprep.subr.bf16.mxu0 %v896_v26 }
  0x57   :  { %633 = vmatpush1.bf16.msra.mxu0 %v894_v27 }
  0x58   :  { %634 = vmatprep.subr.bf16.mxu0 %v899_v28 }
  0x5b   :  { %635 = vmatpush1.bf16.msra.mxu0 %v897_v30 }
  0x5c   :  { %636 = vmatprep.subr.bf16.mxu0 %v902_v31 }
  0x5f   :  { %637 = vmatpush1.bf16.msra.mxu0 %v900_v33 }
  0x62   :  { %655 = vmatmul.mubr.bf16.vlgmr.msra.gmra.mxu0 %v47_v34 }
 0x102   :  { %v574_v36 = vpop.f32.mrf.mxu0 }
 0x103   :  { %v575_v51 = vadd.f32 %v574_v36, %v533_v47 }
 0x104   :  { %v576_v37 = vpop.f32.mrf.mxu0  ;;  %v615_v38 = vpop.f32.mrf.mxu1 }
 0x105   :  { %v577_v52 = vadd.f32 %v576_v37, %v537_v48  ;;  %v616_v55 = vadd.f32 %v615_v38, %v575_v51 }
 0x106   :  { %v578_v39 = vpop.f32.mrf.mxu0  ;;  %v617_v41 = vpop.f32.mrf.mxu1 }
 0x107   :  { %v618_v56 = vadd.f32 %v617_v41, %v577_v52 }
 0x108   :  { %v579_v42 = vpop.f32.mrf.mxu0  ;;  %v619_v43 = vpop.f32.mrf.mxu1 }
 0x10a   :  { %v620_v44 = vpop.f32.mrf.mxu1 }
 0x122   :  { %v656_v54 = vpop.f32.mrf.mxu0 }
 0x123   :  { %v657_v58 = vadd.f32 %v656_v54, %v616_v55 }
 0x124   :  { %v658_v57 = vpop.f32.mrf.mxu0 }
 0x125   :  { %v659_v59 = vadd.f32 %v658_v57, %v618_v56 }
 0x126   :  { %v660_v61 = vpop.f32.mrf.mxu0 }
 0x127   :  { %v665_v62 = vcombine.low %v657_v58, %v659_v59 }
 0x128   :  { %v661_v63 = vpop.f32.mrf.mxu0 }
 0x129   :  { %v672_v0 = vrot.slane %v665_v62, %v671_v60 }
 0x12b   :  { %v679_v45 = vrot.slane %v672_v0, %v671_v60 }
 0x12d   :  { %685 = vst.msk [vmem:[#allocation2] sm:$0x3] %vm683_vm0, %v679_v45 }
 0x12e   :  { %914 = shalt.err (!%p911_p4)
}
 0x12f   :  { %695 = dma.vmem_to_hbm [thread:$0]  %s693_s2, 32, %s1225_s3, [#allocation3]  }
 0x130   :  { %923 = dma.done.wait [#allocation3], 32  }
 0x131   :  { %924 = vsyncadd [#allocation3], 4294967264 }
 0x132   :  { %699 = vsyncpa [#allocation3], 1 }

</bundles_post_ra>
